<compile_context>
chip_gen: v7x
topology: tpu7x:2x2x1
jax: 0.10.0
libtpu: 0.0.40
codegen_flags: <defaults>
</compile_context>

<pallas_src>
import jax
import jax.numpy as jnp
from jax.experimental import pallas as pl
from jax.experimental.pallas import tpu as pltpu  # noqa: F401  (see scaled-variant notes)


def ssr_kernel(x_ref, w1t_ref, b1_ref, w2t_ref, b2_ref,
               pw1_ref, pb1_ref, pw2_ref, pb2_ref,
               out_ref, npw1_ref, npw2_ref):
    f32 = jnp.float32
    bf16 = jnp.bfloat16

    # fc1 / fc2: static weights arrive pre-transposed to (in, out) and bf16.
    xb = x_ref[...].astype(bf16)
    hidden = jnp.maximum(
        jnp.dot(xb, w1t_ref[...], preferred_element_type=f32) + b1_ref[...],
        0.0)                                                               # (B, H) f32
    hb = hidden.astype(bf16)
    output = jax.nn.sigmoid(
        jnp.dot(hb, w2t_ref[...], preferred_element_type=f32) + b2_ref[...])  # (B, O) f32
    out_ref[...] = output.astype(out_ref.dtype)

    # Self-supervised recursive updates.  Pred weights arrive ONLY in torch
    # (out, in) f32 layout; transpose the single tile on the (idle) XLU and
    # cast to bf16 for the MXU.
    pw1t_b = jnp.transpose(pw1_ref[...]).astype(bf16)                      # (H, H) in->out
    pw2t_b = jnp.transpose(pw2_ref[...]).astype(bf16)                      # (O, H) in->out
    pred_hidden = (jnp.dot(hb, pw1t_b, preferred_element_type=f32)
                   + pb1_ref[...])                                         # (B, H)
    pred_output = (jnp.dot(output.astype(bf16), pw2t_b, preferred_element_type=f32)
                   + pb2_ref[...])                                         # (B, H)

    # Two independent cross-sublane batch means (no concat / relayout copy).
    err_h = jnp.mean(hidden - pred_hidden, axis=0, keepdims=True)          # (1, H)
    err_o = jnp.mean(hidden - pred_output, axis=0, keepdims=True)          # (1, H)

    # Torch-layout (out, in) updates: plain row broadcasts, aliased onto inputs.
    npw1_ref[...] = pw1_ref[...] + 0.1 * err_h          # (H, H) + (1, H)
    npw2_ref[...] = pw2_ref[...] + 0.1 * err_o          # (H, O) + (1, H); needs O == H


def _full_spec(shape):
    return pl.BlockSpec(shape, lambda: (0,) * len(shape))


def ssr_forward(x, w1t, b1, w2t, b2, pw1, pb1, pw2, pb2):
    """x:(B,I) f32; w1t:(I,H), w2t:(H,O) static weights pre-transposed to (in,out)
    and stored bf16; pw1:(H,H), pw2:(H,O) mutable pred weights in torch (out,in)
    f32 layout.  Returns (output, new_pw1, new_pw2); new_pw* alias pw* (for true
    in-place HBM reuse, jit with donate_argnums=(5, 7))."""
    B, I = x.shape
    H = w1t.shape[1]
    O = w2t.shape[1]
    assert pw1.shape == (H, H) and pw2.shape == (H, O)
    # The torch broadcast `pred_fc2.weight += 0.1 * err_output` requires O == H.
    assert O == H, "SelfSupervisedRecursiveNN update requires output_dim == hidden_dim"

    flops = 2 * B * (I * H + H * O + H * H + O * H)
    bytes_acc = (4 * (x.size + b1.size + b2.size + pb1.size + pb2.size)
                 + 2 * (w1t.size + w2t.size)            # bf16 static weights
                 + 4 * (pw1.size + pw2.size)            # f32 mutable pred weights (in)
                 + 4 * (B * O + pw1.size + pw2.size))   # outputs
    cost = pl.CostEstimate(flops=flops, transcendentals=B * O,
                           bytes_accessed=bytes_acc)

    args = (x, w1t, b1, w2t, b2, pw1, pb1, pw2, pb2)
    out_shapes = (
        jax.ShapeDtypeStruct((B, O), jnp.float32),   # output = sigmoid(fc2(hidden))
        jax.ShapeDtypeStruct((H, H), jnp.float32),   # updated pred_fc1.weight (torch layout)
        jax.ShapeDtypeStruct((H, O), jnp.float32),   # updated pred_fc2.weight (torch layout)
    )
    return pl.pallas_call(
        ssr_kernel,
        out_shape=out_shapes,
        in_specs=[_full_spec(a.shape) for a in args],
        out_specs=tuple(_full_spec(s.shape) for s in out_shapes),
        input_output_aliases={5: 1, 7: 2},           # pw1 -> new_pw1, pw2 -> new_pw2
        cost_estimate=cost,
    )(*args)


def prune_l1_unstructured(w, amount=0.4):
    # torch.nn.utils.prune.l1_unstructured + prune.remove: zero the
    # round(amount*numel) smallest-|w| entries (tie-breaking near the threshold
    # may differ from torch.topk on exactly-equal magnitudes; count is identical).
    flat = w.reshape(-1)
    k = int(round(amount * flat.size))
    if k == 0:
        return w
    order = jnp.argsort(jnp.abs(flat))
    flat = flat.at[order[:k]].set(0.0)
    return flat.reshape(w.shape)


if __name__ == "__main__":
    key = jax.random.PRNGKey(0)
    # Lane-dense feature dims (multiples of 128).  B=128 fills the MXU rows and
    # amortizes the weight DMA; output_dim must equal hidden_dim for the torch
    # broadcast in the pred_fc2 update.
    B, INPUT_DIM, HIDDEN_DIM, OUTPUT_DIM = 128, 128, 128, 128
    ks = jax.random.split(key, 9)

    def init_linear(kw, kb, out_dim, in_dim):
        bound = 1.0 / jnp.sqrt(jnp.float32(in_dim))
        w = jax.random.uniform(kw, (out_dim, in_dim), jnp.float32, -bound, bound)
        b = jax.random.uniform(kb, (1, out_dim), jnp.float32, -bound, bound)
        return w, b

    w1, b1 = init_linear(ks[0], ks[1], HIDDEN_DIM, INPUT_DIM)     # fc1
    w2, b2 = init_linear(ks[2], ks[3], OUTPUT_DIM, HIDDEN_DIM)    # fc2
    pw1, pb1 = init_linear(ks[4], ks[5], HIDDEN_DIM, HIDDEN_DIM)  # pred_fc1
    pw2, pb2 = init_linear(ks[6], ks[7], HIDDEN_DIM, OUTPUT_DIM)  # pred_fc2

    # apply_pruning(): every nn.Linear weight gets l1_unstructured(amount=0.4)
    w1, w2, pw1, pw2 = (prune_l1_unstructured(w) for w in (w1, w2, pw1, pw2))

    # Static fc1/fc2 weights: transpose to (in, out) and cast to bf16 ONCE at init.
    w1t = jnp.transpose(w1).astype(jnp.bfloat16)
    w2t = jnp.transpose(w2).astype(jnp.bfloat16)

    x = jax.random.normal(ks[8], (B, INPUT_DIM), jnp.float32)

    # Pure-JAX f32 reference of the torch semantics (HIGHEST precision).
    hp = jax.lax.Precision.HIGHEST
    hidden_r = jnp.maximum(jnp.dot(x, w1.T, precision=hp) + b1, 0.0)
    out_r = jax.nn.sigmoid(jnp.dot(hidden_r, w2.T, precision=hp) + b2)
    npw1_r = pw1 + 0.1 * jnp.mean(
        hidden_r - (jnp.dot(hidden_r, pw1.T, precision=hp) + pb1), axis=0, keepdims=True)
    npw2_r = pw2 + 0.1 * jnp.mean(
        hidden_r - (jnp.dot(out_r, pw2.T, precision=hp) + pb2), axis=0, keepdims=True)

    ssr_step = jax.jit(ssr_forward)
    out, new_pw1, new_pw2 = ssr_step(x, w1t, b1, w2t, b2, pw1, pb1, pw2, pb2)
    jax.block_until_ready((out, new_pw1, new_pw2))

    assert out.shape == (B, OUTPUT_DIM) and out.dtype == jnp.float32
    # bf16 MXU operands (per perf review) -> ~1e-3 deviation from the f32 reference.
    assert jnp.allclose(out, out_r, atol=2e-2)
    assert jnp.allclose(new_pw1, npw1_r, atol=5e-3)
    assert jnp.allclose(new_pw2, npw2_r, atol=5e-3)
    print("KERNEL_OK")
</pallas_src>

<mosaic_0001>
module attributes {stable_mosaic.version = 11 : i64} {
  func.func @ssr_kernel(%arg0: memref<128x128xf32, #tpu.memory_space<vmem>>, %arg1: memref<128x128xbf16, #tpu.memory_space<vmem>>, %arg2: memref<1x128xf32, #tpu.memory_space<vmem>>, %arg3: memref<128x128xbf16, #tpu.memory_space<vmem>>, %arg4: memref<1x128xf32, #tpu.memory_space<vmem>>, %arg5: memref<128x128xf32, #tpu.memory_space<vmem>>, %arg6: memref<1x128xf32, #tpu.memory_space<vmem>>, %arg7: memref<128x128xf32, #tpu.memory_space<vmem>>, %arg8: memref<1x128xf32, #tpu.memory_space<vmem>>, %arg9: memref<128x128xf32, #tpu.memory_space<vmem>>, %arg10: memref<128x128xf32, #tpu.memory_space<vmem>>, %arg11: memref<128x128xf32, #tpu.memory_space<vmem>>) attributes {dimension_semantics = [], scalar_prefetch = 0 : i64, scratch_operands = 0 : i64, tpu.core_type = #tpu.core_type<tc>} {
    %c0 = arith.constant 0 : index
    %c0_0 = arith.constant 0 : index
    %0 = vector.load %arg0[%c0, %c0_0] : memref<128x128xf32, #tpu.memory_space<vmem>>, vector<128x128xf32>
    %1 = arith.truncf %0 : vector<128x128xf32> to vector<128x128xbf16>
    %c0_1 = arith.constant 0 : index
    %c0_2 = arith.constant 0 : index
    %2 = vector.load %arg1[%c0_1, %c0_2] : memref<128x128xbf16, #tpu.memory_space<vmem>>, vector<128x128xbf16>
    %cst = arith.constant dense<0.000000e+00> : vector<128x128xf32>
    %3 = tpu.matmul %1, %2, %cst {dimension_numbers = #tpu.dot_dimension_numbers<[1], [0], [0], [1], [0, 0, 1, 1], [], []>} : vector<128x128xbf16>, vector<128x128xbf16>, vector<128x128xf32> -> vector<128x128xf32>
    %c0_3 = arith.constant 0 : index
    %c0_4 = arith.constant 0 : index
    %4 = vector.load %arg2[%c0_3, %c0_4] : memref<1x128xf32, #tpu.memory_space<vmem>>, vector<1x128xf32>
    %5 = vector.broadcast %4 : vector<1x128xf32> to vector<128x128xf32>
    %6 = arith.addf %3, %5 : vector<128x128xf32>
    %cst_5 = arith.constant 0.000000e+00 : f32
    %7 = vector.broadcast %cst_5 : f32 to vector<128x128xf32>
    %8 = arith.maximumf %6, %7 : vector<128x128xf32>
    %9 = arith.truncf %8 : vector<128x128xf32> to vector<128x128xbf16>
    %c0_6 = arith.constant 0 : index
    %c0_7 = arith.constant 0 : index
    %10 = vector.load %arg3[%c0_6, %c0_7] : memref<128x128xbf16, #tpu.memory_space<vmem>>, vector<128x128xbf16>
    %cst_8 = arith.constant dense<0.000000e+00> : vector<128x128xf32>
    %11 = tpu.matmul %9, %10, %cst_8 {dimension_numbers = #tpu.dot_dimension_numbers<[1], [0], [0], [1], [0, 0, 1, 1], [], []>} : vector<128x128xbf16>, vector<128x128xbf16>, vector<128x128xf32> -> vector<128x128xf32>
    %c0_9 = arith.constant 0 : index
    %c0_10 = arith.constant 0 : index
    %12 = vector.load %arg4[%c0_9, %c0_10] : memref<1x128xf32, #tpu.memory_space<vmem>>, vector<1x128xf32>
    %13 = vector.broadcast %12 : vector<1x128xf32> to vector<128x128xf32>
    %14 = arith.addf %11, %13 : vector<128x128xf32>
    %15 = arith.negf %14 : vector<128x128xf32>
    %16 = math.exp %15 : vector<128x128xf32>
    %cst_11 = arith.constant 1.000000e+00 : f32
    %17 = vector.broadcast %cst_11 : f32 to vector<128x128xf32>
    %18 = arith.addf %17, %16 : vector<128x128xf32>
    %19 = arith.divf %17, %18 : vector<128x128xf32>
    %c0_12 = arith.constant 0 : index
    %c0_13 = arith.constant 0 : index
    %20 = vector.load %arg9[%c0_12, %c0_13] : memref<128x128xf32, #tpu.memory_space<vmem>>, vector<128x128xf32>
    tpu.vector_store %arg9[%c0_12, %c0_13], %19 {strides = array<i32>} : memref<128x128xf32, #tpu.memory_space<vmem>>, vector<128x128xf32>,
    %c0_14 = arith.constant 0 : index
    %c0_15 = arith.constant 0 : index
    %21 = vector.load %arg5[%c0_14, %c0_15] : memref<128x128xf32, #tpu.memory_space<vmem>>, vector<128x128xf32>
    %22 = tpu.transpose %21, [1, 0] : vector<128x128xf32> -> vector<128x128xf32>
    %23 = arith.truncf %22 : vector<128x128xf32> to vector<128x128xbf16>
    %c0_16 = arith.constant 0 : index
    %c0_17 = arith.constant 0 : index
    %24 = vector.load %arg7[%c0_16, %c0_17] : memref<128x128xf32, #tpu.memory_space<vmem>>, vector<128x128xf32>
    %25 = tpu.transpose %24, [1, 0] : vector<128x128xf32> -> vector<128x128xf32>
    %26 = arith.truncf %25 : vector<128x128xf32> to vector<128x128xbf16>
    %cst_18 = arith.constant dense<0.000000e+00> : vector<128x128xf32>
    %27 = tpu.matmul %9, %23, %cst_18 {dimension_numbers = #tpu.dot_dimension_numbers<[1], [0], [0], [1], [0, 0, 1, 1], [], []>} : vector<128x128xbf16>, vector<128x128xbf16>, vector<128x128xf32> -> vector<128x128xf32>
    %c0_19 = arith.constant 0 : index
    %c0_20 = arith.constant 0 : index
    %28 = vector.load %arg6[%c0_19, %c0_20] : memref<1x128xf32, #tpu.memory_space<vmem>>, vector<1x128xf32>
    %29 = vector.broadcast %28 : vector<1x128xf32> to vector<128x128xf32>
    %30 = arith.addf %27, %29 : vector<128x128xf32>
    %31 = arith.truncf %19 : vector<128x128xf32> to vector<128x128xbf16>
    %cst_21 = arith.constant dense<0.000000e+00> : vector<128x128xf32>
    %32 = tpu.matmul %31, %26, %cst_21 {dimension_numbers = #tpu.dot_dimension_numbers<[1], [0], [0], [1], [0, 0, 1, 1], [], []>} : vector<128x128xbf16>, vector<128x128xbf16>, vector<128x128xf32> -> vector<128x128xf32>
    %c0_22 = arith.constant 0 : index
    %c0_23 = arith.constant 0 : index
    %33 = vector.load %arg8[%c0_22, %c0_23] : memref<1x128xf32, #tpu.memory_space<vmem>>, vector<1x128xf32>
    %34 = vector.broadcast %33 : vector<1x128xf32> to vector<128x128xf32>
    %35 = arith.addf %32, %34 : vector<128x128xf32>
    %36 = arith.subf %8, %30 : vector<128x128xf32>
    %cst_24 = arith.constant dense<0.000000e+00> : vector<128xf32>
    %37 = vector.multi_reduction <add>, %36, %cst_24 [0] : vector<128x128xf32> to vector<128xf32>
    %38 = vector.shape_cast %37 : vector<128xf32> to vector<1x128xf32>
    %cst_25 = arith.constant 1.280000e+02 : f32
    %39 = vector.broadcast %cst_25 : f32 to vector<1x128xf32>
    %40 = arith.divf %38, %39 : vector<1x128xf32>
    %41 = arith.subf %8, %35 : vector<128x128xf32>
    %cst_26 = arith.constant dense<0.000000e+00> : vector<128xf32>
    %42 = vector.multi_reduction <add>, %41, %cst_26 [0] : vector<128x128xf32> to vector<128xf32>
    %43 = vector.shape_cast %42 : vector<128xf32> to vector<1x128xf32>
    %cst_27 = arith.constant 1.280000e+02 : f32
    %44 = vector.broadcast %cst_27 : f32 to vector<1x128xf32>
    %45 = arith.divf %43, %44 : vector<1x128xf32>
    %c0_28 = arith.constant 0 : index
    %c0_29 = arith.constant 0 : index
    %46 = vector.load %arg5[%c0_28, %c0_29] : memref<128x128xf32, #tpu.memory_space<vmem>>, vector<128x128xf32>
    %cst_30 = arith.constant 1.000000e-01 : f32
    %47 = vector.broadcast %cst_30 : f32 to vector<1x128xf32>
    %48 = arith.mulf %47, %40 : vector<1x128xf32>
    %49 = vector.broadcast %48 : vector<1x128xf32> to vector<128x128xf32>
    %50 = arith.addf %46, %49 : vector<128x128xf32>
    %c0_31 = arith.constant 0 : index
    %c0_32 = arith.constant 0 : index
    %51 = vector.load %arg10[%c0_31, %c0_32] : memref<128x128xf32, #tpu.memory_space<vmem>>, vector<128x128xf32>
    tpu.vector_store %arg10[%c0_31, %c0_32], %50 {strides = array<i32>} : memref<128x128xf32, #tpu.memory_space<vmem>>, vector<128x128xf32>,
    %c0_33 = arith.constant 0 : index
    %c0_34 = arith.constant 0 : index
    %52 = vector.load %arg7[%c0_33, %c0_34] : memref<128x128xf32, #tpu.memory_space<vmem>>, vector<128x128xf32>
    %cst_35 = arith.constant 1.000000e-01 : f32
    %53 = vector.broadcast %cst_35 : f32 to vector<1x128xf32>
    %54 = arith.mulf %53, %45 : vector<1x128xf32>
    %55 = vector.broadcast %54 : vector<1x128xf32> to vector<128x128xf32>
    %56 = arith.addf %52, %55 : vector<128x128xf32>
    %c0_36 = arith.constant 0 : index
    %c0_37 = arith.constant 0 : index
    %57 = vector.load %arg11[%c0_36, %c0_37] : memref<128x128xf32, #tpu.memory_space<vmem>>, vector<128x128xf32>
    tpu.vector_store %arg11[%c0_36, %c0_37], %56 {strides = array<i32>} : memref<128x128xf32, #tpu.memory_space<vmem>>, vector<128x128xf32>,
    return
  }
}

</mosaic_0001>

<bundles_post_ra>
// kernel: ssr_forward.1
= control target key start
LH: loop header
LB: loop body
LE: loop exit
PB: predicated region body
PF: predicated region fallthrough
CT: control target
= control target key end

     0   :  { %17 = vsyncpa [#allocation3], 0  ;;  %s2122_s0 = inlined_call_operand.vmem [shape: f32[128,128], index: 0, kind: input, shape index: {}]   ;;  %s2123_s1 = inlined_call_operand.vmem [shape: bf16[128,128], index: 1, kind: input, shape index: {}]   ;;  %s2124_s2 = inlined_call_operand.vmem [shape: f32[1,128], index: 2, kind: input, shape index: {}]   ;;  %s2125_s3 = inlined_call_operand.vmem [shape: bf16[128,128], index: 3, kind: input, shape index: {}]   ;;  %s2126_s4 = inlined_call_operand.vmem [shape: f32[1,128], index: 4, kind: input, shape index: {}]   ;;  %s2127_s5 = inlined_call_operand.hbm [shape: f32[128,128], index: 5, kind: input, shape index: {}, may-alias: {5,10}]   ;;  %s2128_s6 = inlined_call_operand.vmem [shape: f32[1,128], index: 6, kind: input, shape index: {}]   ;;  %s2129_s7 = inlined_call_operand.hbm [shape: f32[128,128], index: 7, kind: input, shape index: {}, may-alias: {7,11}]   ;;  %s2130_s8 = inlined_call_operand.vmem [shape: f32[1,128], index: 8, kind: input, shape index: {}]   ;;  %s2131_s9 = inlined_call_operand.hbm [shape: f32[128,128], index: 9, kind: output, shape index: {0}]   ;;  %s2132_s10 = inlined_call_operand.hbm [shape: f32[128,128], index: 10, kind: output, shape index: {1}, may-alias: {5,10}]   ;;  %s2133_s11 = inlined_call_operand.hbm [shape: f32[128,128], index: 11, kind: output, shape index: {2}, may-alias: {7,11}]  }
   0x1   :  { %18 = vsyncpa [#allocation6], 0 }
   0x2   :  { %19 = vsyncpa [#allocation4], 0 }
   0x3   :  { %20 = vsyncpa [#allocation9], 0  ;;  %s1651_s17 = smov [#allocation2]   ;;  %s1533_s21 = scalar_lea.hbm %s2127_s5, 2048 }
   0x4   :  { %s36_s18 = sshll.u32 %s1651_s17, 4  ;;  %p1534_p0 = scmp.ne.s32.totalorder %s2127_s5, %s1533_s21  ;;  %s37_s18 = int_to_ptr.vmem [resolvable:$true] %s36_s18 }
   0x5   :  { %p1537_p1 = scmp.lt.u32.totalorder %s1533_s21, %s2127_s5 }
   0x7   :  { %p1539_p2 = pnand %p1537_p1, %p1534_p0 }
   0x9   :  { %1542 = shalt.err (!%p1539_p2)
}
   0xa   :  { %s1543_s26 = scalar_lea.vmem %s37_s18, 2048  ;;  %p1548_p4 = scmp.lt.s32.totalorder %s37_s18, %s37_s18 }
   0xb   :  { %p1544_p3 = scmp.ne.s32.totalorder %s37_s18, %s1543_s26  ;;  %p1549_p5 = scmp.lt.s32.totalorder %s1543_s26, %s1543_s26 }
   0xd   :  { %p1550_p6 = por %p1549_p5, %p1548_p4 }
   0xf   :  { %p1551_p7 = pnand %p1550_p6, %p1544_p3 }
  0x11   :  { %1554 = shalt.err (!%p1551_p7)
}
  0x12   :  { %s1652_s27 = smov 128   ;;  %s1653_s28 = smov 8  }
  0x13   :  { %42 = dma.hbm_to_vmem [thread:$0]  %s2127_s5, 2048, %s37_s18, [#allocation3], %s1652_s27, %s1652_s27, %s1653_s28  }
  0x14   :  { %s1654_s12 = smov [#allocation5]   ;;  %s1555_s16 = scalar_lea.hbm %s2129_s7, 2048 }
  0x15   :  { %s50_s13 = sshll.u32 %s1654_s12, 4  ;;  %p1556_p8 = scmp.ne.s32.totalorder %s2129_s7, %s1555_s16  ;;  %s51_s13 = int_to_ptr.vmem [resolvable:$true] %s50_s13 }
  0x16   :  { %p1559_p9 = scmp.lt.u32.totalorder %s1555_s16, %s2129_s7 }
  0x18   :  { %p1561_p10 = pnand %p1559_p9, %p1556_p8 }
  0x1a   :  { %1564 = shalt.err (!%p1561_p10)
}
  0x1b   :  { %s1565_s22 = scalar_lea.vmem %s51_s13, 2048  ;;  %p1570_p12 = scmp.lt.s32.totalorder %s51_s13, %s51_s13 }
  0x1c   :  { %p1566_p11 = scmp.ne.s32.totalorder %s51_s13, %s1565_s22  ;;  %p1571_p13 = scmp.lt.s32.totalorder %s1565_s22, %s1565_s22 }
  0x1e   :  { %p1572_p0 = por %p1571_p13, %p1570_p12 }
  0x20   :  { %p1573_p1 = pnand %p1572_p0, %p1566_p11 }
  0x22   :  { %1576 = shalt.err (!%p1573_p1)
}
  0x23   :  { %56 = dma.hbm_to_vmem [thread:$0]  %s2129_s7, 2048, %s51_s13, [#allocation6], %s1652_s27, %s1652_s27, %s1653_s28  }
  0x24   :  { %1643 = dma.done.wait [#allocation3], 2048  }
  0x25   :  { %1644 = vsyncadd [#allocation3], 4294965248 }
  0x26   :  { %1645 = dma.done.wait [#allocation6], 2048  }
  0x27   :  { %1646 = vsyncadd [#allocation6], 4294965248  ;;  %v1445_v0 = vld [vmem:[%s2123_s1] sm:$0xff]   ;;  %v1446_v1 = vld [vmem:[%s2123_s1 + $0x8] sm:$0xff]   ;;  %s1656_s13 = smov [#allocation7]  }
  0x28   :  { %1198 = vmatprep.subr.bf16.mxu0 %v1445_v0  ;;  %v1447_v2 = vld [vmem:[%s2123_s1 + $0x10] sm:$0xff]   ;;  %v1448_v3 = vld [vmem:[%s2123_s1 + $0x18] sm:$0xff]   ;;  %v66_v4 = vld [vmem:[%s2122_s0] sm:$0xff] }
  0x29   :  { %1199 = vmatpush3.bf16.msra.mxu0 %v1445_v0  ;;  %v67_v5 = vld [vmem:[%s2122_s0 + $0x8] sm:$0xff]  ;;  %v1449_v7 = vld [vmem:[%s2123_s1 + $0x20] sm:$0xff]   ;;  %v564_v15 = vld [vmem:[#allocation2 + $0x10] sm:$0xff] }
  0x2a   :  { %1200 = vmatprep.subr.bf16.mxu0 %v1446_v1  ;;  %v82_v6 = vpack.c.bf16 %v67_v5, %v66_v4  ;;  %v562_v8 = vld [vmem:[#allocation2] sm:$0xff]  ;;  %v563_v11 = vld [vmem:[#allocation2 + $0x8] sm:$0xff]  ;;  %v620_v16 = vld [vmem:[#allocation5 + $0x10] sm:$0xff] }
  0x2b   :  { %v618_v9 = vld [vmem:[#allocation5] sm:$0xff]  ;;  %v619_v12 = vld [vmem:[#allocation5 + $0x8] sm:$0xff]  ;;  %v1451_v17 = vld [vmem:[%s2123_s1 + $0x30] sm:$0xff]   ;;  %v1337_v18 = vpack.i.bf16 %v620_v16, %v564_v15 }
  0x2c   :  { %1214 = vmatprep.mubr.bf16.mxu0 %v82_v6  ;;  %v1333_v10 = vpack.i.bf16 %v618_v9, %v562_v8  ;;  %v1450_v13 = vld [vmem:[%s2123_s1 + $0x28] sm:$0xff]   ;;  %v1335_v14 = vpack.i.bf16 %v619_v12, %v563_v11  ;;  %v565_v19 = vld [vmem:[#allocation2 + $0x18] sm:$0xff]  ;;  %v566_v22 = vld [vmem:[#allocation2 + $0x20] sm:$0xff] }
  0x2d   :  { %1201 = vmatpush3.bf16.msra.mxu0 %v1446_v1  ;;  %v621_v20 = vld [vmem:[#allocation5 + $0x18] sm:$0xff]  ;;  %v622_v23 = vld [vmem:[#allocation5 + $0x20] sm:$0xff]  ;;  %v68_v25 = vld [vmem:[%s2122_s0 + $0x10] sm:$0xff] }
  0x2e   :  { %1202 = vmatprep.subr.bf16.mxu0 %v1447_v2  ;;  %1334 = vxpose.xlu0.b32.start [1/16] %v1333_v10, 128  ;;  %v1452_v21 = vld [vmem:[%s2123_s1 + $0x38] sm:$0xff]   ;;  %v1339_v24 = vpack.i.bf16 %v621_v20, %v565_v19  ;;  %v70_v27 = vld [vmem:[%s2122_s0 + $0x20] sm:$0xff]  ;;  %v71_v28 = vld [vmem:[%s2122_s0 + $0x28] sm:$0xff]  ;;  %v1341_v29 = vpack.i.bf16 %v622_v23, %v566_v22  ;;  %s1054_s1 = sshll.u32 %s1656_s13, 4  ;;  %s2051_s1 = int_to_ptr.vmem [resolvable:$true] %s1054_s1 }
  0x2f   :  { %v69_v26 = vld [vmem:[%s2122_s0 + $0x18] sm:$0xff]  ;;  %v567_v30 = vld [vmem:[#allocation2 + $0x28] sm:$0xff]  ;;  %v84_v33 = vpack.c.bf16 %v71_v28, %v70_v27  ;;  %v568_v35 = vld [vmem:[#allocation2 + $0x30] sm:$0xff] }
  0x30   :  { %v623_v31 = vld [vmem:[#allocation5 + $0x28] sm:$0xff]  ;;  %v83_v32 = vpack.c.bf16 %v69_v26, %v68_v25  ;;  %v624_v36 = vld [vmem:[#allocation5 + $0x30] sm:$0xff]  ;;  %v73_v38 = vld [vmem:[%s2122_s0 + $0x38] sm:$0xff] }
  0x31   :  { %1203 = vmatpush3.bf16.msra.mxu0 %v1447_v2  ;;  %v1343_v34 = vpack.i.bf16 %v623_v31, %v567_v30  ;;  %v72_v37 = vld [vmem:[%s2122_s0 + $0x30] sm:$0xff]  ;;  %v74_v39 = vld [vmem:[%s2122_s0 + $0x40] sm:$0xff]  ;;  %v75_v40 = vld [vmem:[%s2122_s0 + $0x48] sm:$0xff]  ;;  %v1345_v41 = vpack.i.bf16 %v624_v36, %v568_v35 }
  0x32   :  { %1204 = vmatprep.subr.bf16.mxu0 %v1448_v3  ;;  %1336 = vxpose.xlu0.b32.cont [2/16] %v1335_v14, 128  ;;  %v569_v42 = vld [vmem:[#allocation2 + $0x38] sm:$0xff]  ;;  %v85_v44 = vpack.c.bf16 %v73_v38, %v72_v37  ;;  %v86_v45 = vpack.c.bf16 %v75_v40, %v74_v39  ;;  %v1802_v47 = vld [vmem:[#allocation2 + $0x40] sm:$0xff]  ;;  %v76_v49 = vld [vmem:[%s2122_s0 + $0x50] sm:$0xff] }
  0x33   :  { %v625_v43 = vld [vmem:[#allocation5 + $0x38] sm:$0xff]  ;;  %v626_v48 = vld [vmem:[#allocation5 + $0x40] sm:$0xff]  ;;  %v79_v52 = vld [vmem:[%s2122_s0 + $0x68] sm:$0xff] }
  0x34   :  { %v1347_v46 = vpack.i.bf16 %v625_v43, %v569_v42  ;;  %v77_v50 = vld [vmem:[%s2122_s0 + $0x58] sm:$0xff]  ;;  %v78_v51 = vld [vmem:[%s2122_s0 + $0x60] sm:$0xff]  ;;  %v1349_v53 = vpack.i.bf16 %v626_v48, %v1802_v47  ;;  %v1817_v54 = vld [vmem:[#allocation2 + $0x48] sm:$0xff] }
  0x35   :  { %1205 = vmatpush3.bf16.msra.mxu0 %v1448_v3  ;;  %v627_v55 = vld [vmem:[#allocation5 + $0x48] sm:$0xff]  ;;  %v87_v56 = vpack.c.bf16 %v77_v50, %v76_v49  ;;  %v88_v57 = vpack.c.bf16 %v79_v52, %v78_v51  ;;  %v1820_v59 = vld [vmem:[#allocation2 + $0x50] sm:$0xff]  ;;  %v81_v62 = vld [vmem:[%s2122_s0 + $0x78] sm:$0xff] }
  0x36   :  { %1206 = vmatprep.subr.bf16.mxu0 %v1449_v7  ;;  %1338 = vxpose.xlu0.b32.cont [3/16] %v1337_v18, 128  ;;  %v1351_v58 = vpack.i.bf16 %v627_v55, %v1817_v54  ;;  %v628_v60 = vld [vmem:[#allocation5 + $0x50] sm:$0xff]  ;;  %v1829_v0 = vld [vmem:[#allocation2 + $0x58] sm:$0xff]  ;;  %v1453_v2 = vld [vmem:[%s2125_s3] sm:$0xff]  }
  0x37   :  { %v80_v61 = vld [vmem:[%s2122_s0 + $0x70] sm:$0xff]  ;;  %v1353_v63 = vpack.i.bf16 %v628_v60, %v1820_v59  ;;  %v629_v1 = vld [vmem:[#allocation5 + $0x58] sm:$0xff]  ;;  %1230 = vmatprep.subr.bf16.mxu1 %v1453_v2  ;;  %v1835_v5 = vld [vmem:[#allocation2 + $0x60] sm:$0xff] }
  0x38   :  { %v89_v3 = vpack.c.bf16 %v81_v62, %v80_v61  ;;  %v1355_v4 = vpack.i.bf16 %v629_v1, %v1829_v0  ;;  %1231 = vmatpush3.bf16.msra.mxu1 %v1453_v2  ;;  %v630_v6 = vld [vmem:[#allocation5 + $0x60] sm:$0xff]  ;;  %v1841_v9 = vld [vmem:[#allocation2 + $0x68] sm:$0xff]  ;;  %v1455_v11 = vld [vmem:[%s2125_s3 + $0x10] sm:$0xff]  }
  0x39   :  { %1207 = vmatpush3.bf16.msra.mxu0 %v1449_v7  ;;  %v1454_v7 = vld [vmem:[%s2125_s3 + $0x8] sm:$0xff]   ;;  %v1357_v8 = vpack.i.bf16 %v630_v6, %v1835_v5  ;;  %v632_v14 = vld [vmem:[#allocation5 + $0x70] sm:$0xff]  ;;  %v1456_v15 = vld [vmem:[%s2125_s3 + $0x18] sm:$0xff]  }
  0x3a   :  { %1208 = vmatprep.subr.bf16.mxu0 %v1450_v13  ;;  %1340 = vxpose.xlu0.b32.cont [4/16] %v1339_v24, 128  ;;  %v631_v10 = vld [vmem:[#allocation5 + $0x68] sm:$0xff]  ;;  %v633_v18 = vld [vmem:[#allocation5 + $0x78] sm:$0xff]  ;;  %v1457_v19 = vld [vmem:[%s2125_s3 + $0x20] sm:$0xff]  }
  0x3b   :  { %1232 = vmatprep.subr.bf16.mxu1 %v1454_v7  ;;  %v1359_v12 = vpack.i.bf16 %v631_v10, %v1841_v9  ;;  %v1459_v22 = vld [vmem:[%s2125_s3 + $0x30] sm:$0xff]   ;;  %v1460_v23 = vld [vmem:[%s2125_s3 + $0x38] sm:$0xff]  }
  0x3c   :  { %1233 = vmatpush3.bf16.msra.mxu1 %v1454_v7 }
  0x3d   :  { %1209 = vmatpush3.bf16.msra.mxu0 %v1450_v13  ;;  %1234 = vmatprep.subr.bf16.mxu1 %v1455_v11  ;;  %v1847_v13 = vld [vmem:[#allocation2 + $0x70] sm:$0xff] }
  0x3e   :  { %1210 = vmatprep.subr.bf16.mxu0 %v1451_v17  ;;  %1342 = vxpose.xlu0.b32.cont [5/16] %v1341_v29, 128  ;;  %v1361_v16 = vpack.i.bf16 %v632_v14, %v1847_v13 }
  0x40   :  { %1235 = vmatpush3.bf16.msra.mxu1 %v1455_v11 }
  0x41   :  { %1211 = vmatpush3.bf16.msra.mxu0 %v1451_v17  ;;  %1236 = vmatprep.subr.bf16.mxu1 %v1456_v15  ;;  %v1853_v17 = vld [vmem:[#allocation2 + $0x78] sm:$0xff] }
  0x42   :  { %1212 = vmatprep.subr.bf16.mxu0 %v1452_v21  ;;  %1344 = vxpose.xlu0.b32.cont [6/16] %v1343_v34, 128  ;;  %v1363_v20 = vpack.i.bf16 %v633_v18, %v1853_v17 }
  0x44   :  { %1237 = vmatpush3.bf16.msra.mxu1 %v1456_v15 }
  0x45   :  { %1213 = vmatpush3.bf16.msra.mxu0 %v1452_v21  ;;  %1238 = vmatprep.subr.bf16.mxu1 %v1457_v19  ;;  %v1458_v21 = vld [vmem:[%s2125_s3 + $0x28] sm:$0xff]  }
  0x46   :  { %1346 = vxpose.xlu0.b32.cont [7/16] %v1345_v41, 128 }
  0x48   :  { %1215 = vmatmul.mubr.bf16.vlgmr.msra.gmra.mrb[0].mxu0 %v83_v32  ;;  %1239 = vmatpush3.bf16.msra.mxu1 %v1457_v19 }
  0x49   :  { %1218 = vmatprep.mubr.bf16.mxu0 %v84_v33  ;;  %1240 = vmatprep.subr.bf16.mxu1 %v1458_v21 }
  0x4a   :  { %1348 = vxpose.xlu0.b32.cont [8/16] %v1347_v46, 128 }
  0x4c   :  { %1241 = vmatpush3.bf16.msra.mxu1 %v1458_v21 }
  0x4d   :  { %1242 = vmatprep.subr.bf16.mxu1 %v1459_v22 }
  0x4e   :  { %1350 = vxpose.xlu0.b32.cont [9/16] %v1349_v53, 128 }
  0x50   :  { %1219 = vmatmul.mubr.bf16.gmra.mrb[4].mxu0 %v85_v44  ;;  %1243 = vmatpush3.bf16.msra.mxu1 %v1459_v22 }
  0x51   :  { %1222 = vmatprep.mubr.bf16.mxu0 %v86_v45  ;;  %1244 = vmatprep.subr.bf16.mxu1 %v1460_v23 }
  0x52   :  { %1352 = vxpose.xlu0.b32.cont [10/16] %v1351_v58, 128 }
  0x54   :  { %1245 = vmatpush3.bf16.msra.mxu1 %v1460_v23 }
  0x56   :  { %1354 = vxpose.xlu0.b32.cont [11/16] %v1353_v63, 128 }
  0x58   :  { %1223 = vmatmul.mubr.bf16.gmra.mrb[8].mxu0 %v87_v56 }
  0x59   :  { %1226 = vmatprep.mubr.bf16.mxu0 %v88_v57 }
  0x5a   :  { %1356 = vxpose.xlu0.b32.cont [12/16] %v1355_v4, 128 }
  0x5e   :  { %1358 = vxpose.xlu0.b32.cont [13/16] %v1357_v8, 128 }
  0x60   :  { %1227 = vmatmul.mubr.bf16.gmra.mrb[12].mxu0 %v89_v3 }
  0x62   :  { %1360 = vxpose.xlu0.b32.cont [14/16] %v1359_v12, 128 }
  0x66   :  { %1362 = vxpose.xlu0.b32.cont [15/16] %v1361_v16, 128 }
  0x6a   :  { %1364 = vxpose.xlu0.b32.end [16/16] %v1363_v20, 128  ;;  %v1904_v20 = vld [vmem:[%s2124_s2] ss:$0 sm:$0xff] }
  0xae   :  { %v1365_v24 = vpop.trf.xlu0 }
  0xaf   :  { %v1366_v25 = vunpack.i.l.bf16 %v1365_v24  ;;  %v1369_v26 = vunpack.i.h.bf16 %v1365_v24 }
  0xb2   :  { %v1370_v27 = vpop.trf.xlu0 }
  0xb3   :  { %v1374_v28 = vunpack.i.h.bf16 %v1370_v27  ;;  %v1371_v29 = vunpack.i.l.bf16 %v1370_v27 }
  0xb5   :  { %v610_v30 = vpack.c.bf16 %v1371_v29, %v1366_v25  ;;  %v1868_v32 = vpack.c.bf16 %v1374_v28, %v1369_v26 }
  0xb6   :  { %v1375_v31 = vpop.trf.xlu0 }
  0xb7   :  { %1262 = vmatprep.subr.bf16.mxu0 %v610_v30  ;;  %1294 = vmatprep.subr.bf16.mxu1 %v1868_v32  ;;  %v1379_v33 = vunpack.i.h.bf16 %v1375_v31  ;;  %v1376_v34 = vunpack.i.l.bf16 %v1375_v31 }
  0xb8   :  { %1263 = vmatpush3.bf16.msra.mxu0 %v610_v30 }
  0xba   :  { %v1380_v35 = vpop.trf.xlu0 }
  0xbb   :  { %v1384_v36 = vunpack.i.h.bf16 %v1380_v35  ;;  %v1381_v37 = vunpack.i.l.bf16 %v1380_v35 }
  0xbd   :  { %v611_v38 = vpack.c.bf16 %v1381_v37, %v1376_v34  ;;  %v1871_v39 = vpack.c.bf16 %v1384_v36, %v1379_v33 }
  0xbe   :  { %v1385_v40 = vpop.trf.xlu0 }
  0xbf   :  { %1264 = vmatprep.subr.bf16.mxu0 %v611_v38  ;;  %v1389_v41 = vunpack.i.h.bf16 %v1385_v40  ;;  %v1386_v42 = vunpack.i.l.bf16 %v1385_v40 }
  0xc0   :  { %1265 = vmatpush3.bf16.msra.mxu0 %v611_v38 }
  0xc2   :  { %v1390_v43 = vpop.trf.xlu0 }
  0xc3   :  { %v1394_v44 = vunpack.i.h.bf16 %v1390_v43  ;;  %v1391_v45 = vunpack.i.l.bf16 %v1390_v43 }
  0xc5   :  { %v612_v46 = vpack.c.bf16 %v1391_v45, %v1386_v42  ;;  %v1873_v48 = vpack.c.bf16 %v1394_v44, %v1389_v41 }
  0xc6   :  { %v1395_v49 = vpop.trf.xlu0 }
  0xc7   :  { %1266 = vmatprep.subr.bf16.mxu0 %v612_v46  ;;  %v1399_v50 = vunpack.i.h.bf16 %v1395_v49  ;;  %v1396_v51 = vunpack.i.l.bf16 %v1395_v49 }
  0xc8   :  { %1267 = vmatpush3.bf16.msra.mxu0 %v612_v46 }
  0xca   :  { %v1400_v52 = vpop.trf.xlu0 }
  0xcb   :  { %v1404_v53 = vunpack.i.h.bf16 %v1400_v52  ;;  %v1401_v55 = vunpack.i.l.bf16 %v1400_v52 }
  0xcd   :  { %v613_v56 = vpack.c.bf16 %v1401_v55, %v1396_v51  ;;  %v1875_v57 = vpack.c.bf16 %v1404_v53, %v1399_v50 }
  0xce   :  { %v1877_v58 = vpop.trf.xlu0 }
  0xcf   :  { %1268 = vmatprep.subr.bf16.mxu0 %v613_v56  ;;  %v1406_v60 = vunpack.i.l.bf16 %v1877_v58 }
  0xd0   :  { %1269 = vmatpush3.bf16.msra.mxu0 %v613_v56 }
  0xd2   :  { %v1880_v61 = vpop.trf.xlu0 }
  0xd3   :  { %v1411_v62 = vunpack.i.l.bf16 %v1880_v61 }
  0xd5   :  { %v614_v63 = vpack.c.bf16 %v1411_v62, %v1406_v60 }
  0xd6   :  { %v1883_v1 = vpop.trf.xlu0 }
  0xd7   :  { %1270 = vmatprep.subr.bf16.mxu0 %v614_v63  ;;  %v1416_v2 = vunpack.i.l.bf16 %v1883_v1 }
  0xd8   :  { %1271 = vmatpush3.bf16.msra.mxu0 %v614_v63 }
  0xda   :  { %v1886_v3 = vpop.trf.xlu0 }
  0xdb   :  { %v1421_v4 = vunpack.i.l.bf16 %v1886_v3 }
  0xdd   :  { %v615_v6 = vpack.c.bf16 %v1421_v4, %v1416_v2 }
  0xde   :  { %v1889_v7 = vpop.trf.xlu0 }
  0xdf   :  { %1272 = vmatprep.subr.bf16.mxu0 %v615_v6  ;;  %v1426_v8 = vunpack.i.l.bf16 %v1889_v7 }
  0xe0   :  { %1273 = vmatpush3.bf16.msra.mxu0 %v615_v6 }
  0xe2   :  { %v1892_v10 = vpop.trf.xlu0 }
  0xe3   :  { %v1431_v11 = vunpack.i.l.bf16 %v1892_v10 }
  0xe5   :  { %v616_v12 = vpack.c.bf16 %v1431_v11, %v1426_v8 }
  0xe6   :  { %v1895_v14 = vpop.trf.xlu0 }
  0xe7   :  { %1274 = vmatprep.subr.bf16.mxu0 %v616_v12  ;;  %v1436_v15 = vunpack.i.l.bf16 %v1895_v14 }
  0xe8   :  { %1275 = vmatpush3.bf16.msra.mxu0 %v616_v12 }
  0xea   :  { %v1898_v16 = vpop.trf.xlu0 }
  0xeb   :  { %v1441_v18 = vunpack.i.l.bf16 %v1898_v16 }
  0xed   :  { %v617_v19 = vpack.c.bf16 %v1441_v18, %v1436_v15 }
  0xef   :  { %1276 = vmatprep.subr.bf16.mxu0 %v617_v19 }
  0xf0   :  { %1277 = vmatpush3.bf16.msra.mxu0 %v617_v19 }
 0x11b   :  { %v1216_v21 = vpop.f32.mrb[0].mxu0 }
 0x11c   :  { %v195_v22 = vpop.f32.mrb[1].mxu0  ;;  %v204_v25 = vadd.f32 %v1216_v21, %v1904_v20 }
 0x11d   :  { %v196_v23 = vadd.f32 %v1904_v20, %v195_v22  ;;  %v1217_v24 = vpop.f32.mrb[2].mxu0 }
 0x11e   :  { %v207_v26 = vadd.f32 %v1217_v24, %v1904_v20  ;;  %v198_v27 = vpop.f32.mrb[3].mxu0  ;;  %v1916_v33 = vmax.f32 %v204_v25, 0.0 }
 0x11f   :  { %v199_v28 = vadd.f32 %v1904_v20, %v198_v27  ;;  %v1912_v30 = vmax.f32 %v196_v23, 0.0 }
 0x120   :  { %v1910_v29 = vmax.f32 %v207_v26, 0.0 }
 0x121   :  { %v1914_v31 = vmax.f32 %v199_v28, 0.0 }
 0x122   :  { %v275_v37 = vpack.c.bf16 %v1910_v29, %v1916_v33 }
 0x123   :  { %v1220_v34 = vpop.f32.mrb[4].mxu0  ;;  %v274_v35 = vpack.c.bf16 %v1914_v31, %v1912_v30 }
 0x124   :  { %v211_v36 = vpop.f32.mrb[5].mxu0  ;;  %v220_v41 = vadd.f32 %v1220_v34, %v1904_v20 }
 0x125   :  { %v212_v38 = vadd.f32 %v1904_v20, %v211_v36  ;;  %v1221_v40 = vpop.f32.mrb[6].mxu0  ;;  %1246 = vmatprep.mubr.bf16.mxu1 %v274_v35  ;;  %1278 = vmatprep.mubr.bf16.mxu0 %v274_v35  ;;  %v1414_v35 = vunpack.i.h.bf16 %v1880_v61  ;;  %v1444_v61 = vunpack.i.h.bf16 %v1898_v16 }
 0x126   :  { %v223_v42 = vadd.f32 %v1221_v40, %v1904_v20  ;;  %v214_v43 = vpop.f32.mrb[7].mxu0  ;;  %1247 = vmatmul.mubr.bf16.vlgmr.msra.gmra.mrb[0].mxu1 %v275_v37  ;;  %1279 = vmatmul.mubr.bf16.vlgmr.msra.gmra.mrb[16].mxu0 %v275_v37  ;;  %v1934_v50 = vmax.f32 %v220_v41, 0.0  ;;  %v1419_v37 = vunpack.i.h.bf16 %v1883_v1  ;;  %v1429_v41 = vunpack.i.h.bf16 %v1889_v7  ;;  %v1988_v1 = vld [vmem:[%s2126_s4] ss:$0 sm:$0xff]  ;;  %s1655_s4 = smov [#allocation8]  }
 0x127   :  { %v215_v44 = vadd.f32 %v1904_v20, %v214_v43  ;;  %1295 = vmatpush3.bf16.msra.mxu1 %v1868_v32  ;;  %v1930_v46 = vmax.f32 %v212_v38, 0.0  ;;  %v1424_v38 = vunpack.i.h.bf16 %v1886_v3  ;;  %v1993_v3 = vld [vmem:[%s2128_s6] ss:$0 sm:$0xff]  ;;  %s1066_s6 = sshll.u32 %s1655_s4, 4  ;;  %s1067_s6 = int_to_ptr.vmem [resolvable:$true] %s1066_s6 }
 0x128   :  { %v1927_v45 = vmax.f32 %v223_v42, 0.0  ;;  %1296 = vmatprep.subr.bf16.mxu1 %v1871_v39  ;;  %v1434_v42 = vunpack.i.h.bf16 %v1892_v10  ;;  %s1577_s14 = scalar_lea.vmem %s1067_s6, 2048  ;;  %p1582_p3 = scmp.lt.s32.totalorder %s1067_s6, %s1067_s6 }
 0x129   :  { %v1932_v49 = vmax.f32 %v215_v44, 0.0  ;;  %v671_v40 = vpack.c.bf16 %v1424_v38, %v1419_v37  ;;  %p1578_p2 = scmp.ne.s32.totalorder %s1067_s6, %s1577_s14  ;;  %p1583_p4 = scmp.lt.s32.totalorder %s1577_s14, %s1577_s14 }
 0x12a   :  { %v277_v32 = vpack.c.bf16 %v1927_v45, %v1934_v50  ;;  %v672_v43 = vpack.c.bf16 %v1434_v42, %v1429_v41 }
 0x12b   :  { %v1224_v51 = vpop.f32.mrb[8].mxu0  ;;  %v276_v52 = vpack.c.bf16 %v1932_v49, %v1930_v46  ;;  %1297 = vmatpush3.bf16.msra.mxu1 %v1871_v39  ;;  %p1584_p5 = por %p1583_p4, %p1582_p3 }
 0x12c   :  { %v227_v53 = vpop.f32.mrb[9].mxu0  ;;  %1298 = vmatprep.subr.bf16.mxu1 %v1873_v48  ;;  %v236_v60 = vadd.f32 %v1224_v51, %v1904_v20 }
 0x12d   :  { %v228_v55 = vadd.f32 %v1904_v20, %v227_v53  ;;  %v1225_v56 = vpop.f32.mrb[10].mxu0  ;;  %1250 = vmatprep.mubr.bf16.mxu1 %v276_v52  ;;  %1282 = vmatprep.mubr.bf16.mxu0 %v276_v52  ;;  %p1585_p6 = pnand %p1584_p5, %p1578_p2 }
 0x12e   :  { %v239_v62 = vadd.f32 %v1225_v56, %v1904_v20  ;;  %v230_v63 = vpop.f32.mrb[11].mxu0  ;;  %1251 = vmatmul.mubr.bf16.gmra.mrb[4].mxu1 %v277_v32  ;;  %1283 = vmatmul.mubr.bf16.gmra.mrb[20].mxu0 %v277_v32  ;;  %v1954_v8 = vmax.f32 %v236_v60, 0.0 }
 0x12f   :  { %v231_v39 = vadd.f32 %v1904_v20, %v230_v63  ;;  %1299 = vmatpush3.bf16.msra.mxu1 %v1873_v48  ;;  %v1950_v4 = vmax.f32 %v228_v55, 0.0 }
 0x130   :  { %v1947_v2 = vmax.f32 %v239_v62, 0.0  ;;  %1300 = vmatprep.subr.bf16.mxu1 %v1875_v57 }
 0x131   :  { %v1952_v6 = vmax.f32 %v231_v39, 0.0 }
 0x132   :  { %v279_v48 = vpack.c.bf16 %v1947_v2, %v1954_v8 }
 0x133   :  { %v1228_v11 = vpop.f32.mrb[12].mxu0  ;;  %v278_v12 = vpack.c.bf16 %v1952_v6, %v1950_v4  ;;  %1301 = vmatpush3.bf16.msra.mxu1 %v1875_v57 }
 0x134   :  { %v243_v15 = vpop.f32.mrb[13].mxu0  ;;  %v252_v21 = vadd.f32 %v1228_v11, %v1904_v20 }
 0x135   :  { %v244_v18 = vadd.f32 %v1904_v20, %v243_v15  ;;  %v1229_v19 = vpop.f32.mrb[14].mxu0  ;;  %1254 = vmatprep.mubr.bf16.mxu1 %v278_v12  ;;  %1286 = vmatprep.mubr.bf16.mxu0 %v278_v12 }
 0x136   :  { %v255_v22 = vadd.f32 %v1229_v19, %v1904_v20  ;;  %v246_v23 = vpop.f32.mrb[15].mxu0  ;;  %1255 = vmatmul.mubr.bf16.gmra.mrb[8].mxu1 %v279_v48  ;;  %1287 = vmatmul.mubr.bf16.gmra.mrb[24].mxu0 %v279_v48  ;;  %v1971_v27 = vmax.f32 %v252_v21, 0.0 }
 0x137   :  { %v247_v24 = vadd.f32 %v1904_v20, %v246_v23  ;;  %v1967_v57 = vmax.f32 %v244_v18, 0.0  ;;  %v1409_v20 = vunpack.i.h.bf16 %v1877_v58  ;;  %v1439_v58 = vunpack.i.h.bf16 %v1895_v14 }
 0x138   :  { %v1965_v25 = vmax.f32 %v255_v22, 0.0 }
 0x139   :  { %v1969_v26 = vmax.f32 %v247_v24, 0.0  ;;  %v670_v36 = vpack.c.bf16 %v1414_v35, %v1409_v20  ;;  %v673_v44 = vpack.c.bf16 %v1444_v61, %v1439_v58 }
 0x13a   :  { %v281_v34 = vpack.c.bf16 %v1965_v25, %v1971_v27 }
 0x13b   :  { %v280_v28 = vpack.c.bf16 %v1969_v26, %v1967_v57  ;;  %1302 = vmatprep.subr.bf16.mxu1 %v670_v36 }
 0x13c   :  { %1303 = vmatpush3.bf16.msra.mxu1 %v670_v36 }
 0x13d   :  { %1258 = vmatprep.mubr.bf16.mxu1 %v280_v28  ;;  %1290 = vmatprep.mubr.bf16.mxu0 %v280_v28 }
 0x13e   :  { %1259 = vmatmul.mubr.bf16.gmra.mrb[12].mxu1 %v281_v34  ;;  %1291 = vmatmul.mubr.bf16.gmra.mrb[28].mxu0 %v281_v34 }
 0x13f   :  { %1304 = vmatprep.subr.bf16.mxu1 %v671_v40 }
 0x140   :  { %1305 = vmatpush3.bf16.msra.mxu1 %v671_v40 }
 0x141   :  { %1306 = vmatprep.subr.bf16.mxu1 %v672_v43 }
 0x144   :  { %1307 = vmatpush3.bf16.msra.mxu1 %v672_v43 }
 0x145   :  { %1308 = vmatprep.subr.bf16.mxu1 %v673_v44 }
 0x148   :  { %1309 = vmatpush3.bf16.msra.mxu1 %v673_v44 }
 0x1f9   :  { %v1248_v7 = vpop.f32.mrb[0].mxu1  ;;  %v1280_v10 = vpop.f32.mrb[16].mxu0 }
 0x1fa   :  { %v396_v51 = vadd.f32 %v1248_v7, %v1988_v1  ;;  %v387_v14 = vpop.f32.mrb[1].mxu1  ;;  %v715_v52 = vpop.f32.mrb[17].mxu0  ;;  %v724_v39 = vadd.f32 %v1280_v10, %v1993_v3 }
 0x1fb   :  { %v388_v16 = vadd.f32 %v1988_v1, %v387_v14  ;;  %v716_v53 = vadd.f32 %v1993_v3, %v715_v52  ;;  %v1249_v32 = vpop.f32.mrb[2].mxu1  ;;  %v1281_v55 = vpop.f32.mrb[18].mxu0 }
 0x1fc   :  { %v1118_v56 = vmul.f32 -1.442695, %v396_v51  ;;  %v399_v60 = vadd.f32 %v1249_v32, %v1988_v1  ;;  %v390_v62 = vpop.f32.mrb[3].mxu1  ;;  %v718_v63 = vpop.f32.mrb[19].mxu0  ;;  %v727_v18 = vadd.f32 %v1281_v55, %v1993_v3  ;;  %v892_v23 = vsub.f32 %v1916_v33, %v724_v39 }
 0x1fd   :  { %v1116_v11 = vmul.f32 -1.442695, %v388_v16  ;;  %v391_v12 = vadd.f32 %v1988_v1, %v390_v62  ;;  %v719_v15 = vadd.f32 %v1993_v3, %v718_v63  ;;  %v890_v19 = vsub.f32 %v1912_v30, %v716_v53 }
 0x1fe   :  { %1461 = vpow2.f32 %v1118_v56  ;;  %v1119_v48 = vmul.f32 -1.442695, %v399_v60  ;;  %v893_v37 = vsub.f32 %v1910_v29, %v727_v18 }
 0x1ff   :  { %1463 = vpow2.f32 %v1116_v11  ;;  %v1117_v21 = vmul.f32 -1.442695, %v391_v12  ;;  %v891_v22 = vsub.f32 %v1914_v31, %v719_v15 }
 0x200   :  { %1465 = vpow2.f32 %v1119_v48 }
 0x201   :  { %1467 = vpow2.f32 %v1117_v21  ;;  %v906_v24 = vadd.f32 %v891_v22, %v890_v19  ;;  %v1252_v28 = vpop.f32.mrb[4].mxu1  ;;  %v1284_v34 = vpop.f32.mrb[20].mxu0 }
 0x202   :  { %v412_v20 = vadd.f32 %v1252_v28, %v1988_v1  ;;  %v403_v35 = vpop.f32.mrb[5].mxu1  ;;  %v731_v36 = vpop.f32.mrb[21].mxu0  ;;  %v740_v61 = vadd.f32 %v1284_v34, %v1993_v3 }
 0x203   :  { %v907_v38 = vadd.f32 %v906_v24, %v892_v23  ;;  %v404_v40 = vadd.f32 %v1988_v1, %v403_v35  ;;  %v732_v41 = vadd.f32 %v1993_v3, %v731_v36  ;;  %v1253_v42 = vpop.f32.mrb[6].mxu1  ;;  %v1285_v43 = vpop.f32.mrb[22].mxu0 }
 0x204   :  { %v1122_v58 = vmul.f32 -1.442695, %v412_v20  ;;  %v415_v44 = vadd.f32 %v1253_v42, %v1988_v1  ;;  %v406_v7 = vpop.f32.mrb[7].mxu1  ;;  %v734_v10 = vpop.f32.mrb[23].mxu0  ;;  %v743_v32 = vadd.f32 %v1285_v43, %v1993_v3  ;;  %v896_v12 = vsub.f32 %v1934_v50, %v740_v61 }
 0x205   :  { %v1120_v51 = vmul.f32 -1.442695, %v404_v40  ;;  %v894_v14 = vsub.f32 %v1930_v46, %v732_v41  ;;  %v908_v52 = vadd.f32 %v907_v38, %v893_v37  ;;  %v407_v16 = vadd.f32 %v1988_v1, %v406_v7 }
 0x206   :  { %1469 = vpow2.f32 %v1122_v58  ;;  %v1123_v53 = vmul.f32 -1.442695, %v415_v44  ;;  %v735_v55 = vadd.f32 %v1993_v3, %v734_v10  ;;  %v897_v21 = vsub.f32 %v1927_v45, %v743_v32 }
 0x207   :  { %1471 = vpow2.f32 %v1120_v51  ;;  %v909_v56 = vadd.f32 %v908_v52, %v894_v14  ;;  %v1121_v60 = vmul.f32 -1.442695, %v407_v16 }
 0x208   :  { %v1462_v62 = vpop.eup %1461  ;;  %1473 = vpow2.f32 %v1123_v53  ;;  %v895_v63 = vsub.f32 %v1932_v49, %v735_v55 }
 0x209   :  { %v1464_v39 = vpop.eup %1463  ;;  %v500_v11 = vadd.f32 1.0, %v1462_v62  ;;  %1475 = vpow2.f32 %v1121_v60  ;;  %v1256_v15 = vpop.f32.mrb[8].mxu1 }
 0x20a   :  { %v1288_v48 = vpop.f32.mrb[24].mxu0  ;;  %v1466_v18 = vpop.eup %1465  ;;  %v498_v19 = vadd.f32 1.0, %v1464_v39  ;;  %v910_v22 = vadd.f32 %v909_v56, %v895_v63  ;;  %v428_v23 = vadd.f32 %v1256_v15, %v1988_v1 }
 0x20b   :  { %v419_v24 = vpop.f32.mrb[9].mxu1  ;;  %v747_v28 = vpop.f32.mrb[25].mxu0  ;;  %1477 = vrcp.f32 %v500_v11  ;;  %v501_v20 = vadd.f32 1.0, %v1466_v18  ;;  %v756_v61 = vadd.f32 %v1288_v48, %v1993_v3 }
 0x20c   :  { %v1468_v34 = vpop.eup %1467  ;;  %v420_v35 = vadd.f32 %v1988_v1, %v419_v24  ;;  %v748_v36 = vadd.f32 %v1993_v3, %v747_v28  ;;  %v1257_v37 = vpop.f32.mrb[10].mxu1  ;;  %1479 = vrcp.f32 %v498_v19  ;;  %v911_v41 = vadd.f32 %v910_v22, %v896_v12 }
 0x20d   :  { %v1289_v38 = vpop.f32.mrb[26].mxu0  ;;  %v499_v40 = vadd.f32 1.0, %v1468_v34  ;;  %v1126_v42 = vmul.f32 -1.442695, %v428_v23  ;;  %v422_v43 = vpop.f32.mrb[11].mxu1  ;;  %1481 = vrcp.f32 %v501_v20  ;;  %v431_v51 = vadd.f32 %v1257_v37, %v1988_v1 }
 0x20e   :  { %v750_v58 = vpop.f32.mrb[27].mxu0  ;;  %v1124_v44 = vmul.f32 -1.442695, %v420_v35  ;;  %v898_v7 = vsub.f32 %v1950_v4, %v748_v36  ;;  %v912_v10 = vadd.f32 %v911_v41, %v897_v21  ;;  %v423_v14 = vadd.f32 %v1988_v1, %v422_v43 }
 0x20f   :  { %1483 = vrcp.f32 %v499_v40  ;;  %v751_v52 = vadd.f32 %v1993_v3, %v750_v58  ;;  %v1127_v32 = vmul.f32 -1.442695, %v431_v51  ;;  %v759_v55 = vadd.f32 %v1289_v38, %v1993_v3 }
 0x210   :  { %1485 = vpow2.f32 %v1126_v42  ;;  %v1470_v16 = vpop.eup %1469  ;;  %v913_v53 = vadd.f32 %v912_v10, %v898_v7  ;;  %v900_v62 = vsub.f32 %v1954_v8, %v756_v61  ;;  %v1125_v48 = vmul.f32 -1.442695, %v423_v14 }
 0x211   :  { %1487 = vpow2.f32 %v1124_v44  ;;  %v1472_v56 = vpop.eup %1471  ;;  %v504_v60 = vadd.f32 1.0, %v1470_v16  ;;  %v899_v63 = vsub.f32 %v1952_v6, %v751_v52  ;;  %v1260_v39 = vpop.f32.mrb[12].mxu1  ;;  %v901_v36 = vsub.f32 %v1947_v2, %v759_v55 }
 0x212   :  { %v1292_v11 = vpop.f32.mrb[28].mxu0  ;;  %v1474_v12 = vpop.eup %1473  ;;  %v502_v15 = vadd.f32 1.0, %v1472_v56  ;;  %1489 = vpow2.f32 %v1127_v32  ;;  %v444_v18 = vadd.f32 %v1260_v39, %v1988_v1 }
 0x213   :  { %v435_v19 = vpop.f32.mrb[13].mxu1  ;;  %v763_v21 = vpop.f32.mrb[29].mxu0  ;;  %1491 = vrcp.f32 %v504_v60  ;;  %v505_v23 = vadd.f32 1.0, %v1474_v12  ;;  %v914_v24 = vadd.f32 %v913_v53, %v899_v63  ;;  %v772_v44 = vadd.f32 %v1292_v11, %v1993_v3 }
 0x214   :  { %v1476_v22 = vpop.eup %1475  ;;  %v436_v28 = vadd.f32 %v1988_v1, %v435_v19  ;;  %v1261_v34 = vpop.f32.mrb[14].mxu1  ;;  %1493 = vrcp.f32 %v502_v15  ;;  %v1130_v37 = vmul.f32 -1.442695, %v444_v18  ;;  %v764_v58 = vadd.f32 %v1993_v3, %v763_v21 }
 0x215   :  { %v1293_v20 = vpop.f32.mrb[30].mxu0  ;;  %v503_v35 = vadd.f32 1.0, %v1476_v22  ;;  %v438_v38 = vpop.f32.mrb[15].mxu1  ;;  %1495 = vrcp.f32 %v505_v23  ;;  %v915_v42 = vadd.f32 %v914_v24, %v900_v62  ;;  %v447_v7 = vadd.f32 %v1261_v34, %v1988_v1 }
 0x216   :  { %v766_v40 = vpop.f32.mrb[31].mxu0  ;;  %v1478_v41 = vpop.eup %1477  ;;  %v1128_v43 = vmul.f32 -1.442695, %v436_v28  ;;  %v439_v10 = vadd.f32 %v1988_v1, %v438_v38  ;;  %v902_v14 = vsub.f32 %v1967_v57, %v764_v58  ;;  %v775_v55 = vadd.f32 %v1293_v20, %v1993_v3 }
 0x217   :  { %v1480_v61 = vpop.eup %1479  ;;  %548 = vst [vmem:[#allocation7 + $0x10] sm:$0xff] %v1478_v41  ;;  %1497 = vrcp.f32 %v503_v35  ;;  %v916_v52 = vadd.f32 %v915_v42, %v901_v36  ;;  %v767_v16 = vadd.f32 %v1993_v3, %v766_v40  ;;  %v1131_v32 = vmul.f32 -1.442695, %v447_v7 }
 0x218   :  { %v1482_v51 = vpop.eup %1481  ;;  %546 = vst [vmem:[#allocation7] sm:$0xff] %v1480_v61  ;;  %1499 = vpow2.f32 %v1125_v48  ;;  %v1129_v56 = vmul.f32 -1.442695, %v439_v10  ;;  %v904_v48 = vsub.f32 %v1971_v27, %v772_v44  ;;  %v905_v22 = vsub.f32 %v1965_v25, %v775_v55 }
 0x219   :  { %v1484_v53 = vpop.eup %1483  ;;  %549 = vst [vmem:[#allocation7 + $0x18] sm:$0xff] %v1482_v51  ;;  %1501 = vpow2.f32 %v1130_v37  ;;  %v917_v62 = vadd.f32 %v916_v52, %v902_v14  ;;  %v903_v1 = vsub.f32 %v1969_v26, %v767_v16  ;;  %v779_v12 = vpack.c.bf16 %v1482_v51, %v1478_v41 }
 0x21a   :  { %v1486_v60 = vpop.eup %1485  ;;  %547 = vst [vmem:[#allocation7 + $0x8] sm:$0xff] %v1484_v53  ;;  %1503 = vpow2.f32 %v1128_v43  ;;  %v778_v63 = vpack.c.bf16 %v1484_v53, %v1480_v61 }
 0x21b   :  { %v1488_v39 = vpop.eup %1487  ;;  %v508_v11 = vadd.f32 1.0, %v1486_v60  ;;  %1505 = vpow2.f32 %v1131_v32  ;;  %v918_v18 = vadd.f32 %v917_v62, %v903_v1 }
 0x21c   :  { %v506_v15 = vadd.f32 1.0, %v1488_v39  ;;  %1507 = vpow2.f32 %v1129_v56  ;;  %1310 = vmatprep.mubr.bf16.mxu1 %v778_v63  ;;  %v1490_v19 = vpop.eup %1489 }
 0x21d   :  { %1509 = vrcp.f32 %v508_v11  ;;  %1311 = vmatmul.mubr.bf16.vlgmr.msra.gmra.mrb[16].mxu1 %v779_v12  ;;  %v1492_v3 = vpop.eup %1491  ;;  %v509_v21 = vadd.f32 1.0, %v1490_v19  ;;  %v919_v23 = vadd.f32 %v918_v18, %v904_v48  ;;  %v1525_v48 = vld [vmem:[#allocation2] sm:$0xff]  ;;  %v1526_v19 = vld [vmem:[#allocation2 + $0x8] sm:$0xff] }
 0x21e   :  { %1511 = vrcp.f32 %v506_v15  ;;  %v1494_v24 = vpop.eup %1493  ;;  %552 = vst [vmem:[#allocation7 + $0x30] sm:$0xff] %v1492_v3 }
 0x21f   :  { %v1496_v28 = vpop.eup %1495  ;;  %550 = vst [vmem:[#allocation7 + $0x20] sm:$0xff] %v1494_v24  ;;  %1513 = vrcp.f32 %v509_v21  ;;  %v920_v34 = vadd.f32 %v919_v23, %v905_v22  ;;  %v1527_v21 = vld [vmem:[#allocation2 + $0x10] sm:$0xff]  ;;  %v1528_v23 = vld [vmem:[#allocation2 + $0x18] sm:$0xff] }
 0x220   :  { %553 = vst [vmem:[#allocation7 + $0x38] sm:$0xff] %v1496_v28  ;;  %v781_v35 = vpack.c.bf16 %v1496_v28, %v1492_v3 }
 0x221   :  { %v1498_v20 = vpop.eup %1497  ;;  %v921_v37 = vrot.slane %v920_v34, 4 }
 0x222   :  { %v1500_v36 = vpop.eup %1499  ;;  %551 = vst [vmem:[#allocation7 + $0x28] sm:$0xff] %v1498_v20  ;;  %v780_v38 = vpack.c.bf16 %v1498_v20, %v1494_v24  ;;  %v1529_v20 = vld [vmem:[#allocation2 + $0x20] sm:$0xff] }
 0x223   :  { %v1502_v40 = vpop.eup %1501  ;;  %v507_v41 = vadd.f32 1.0, %v1500_v36  ;;  %v922_v58 = vadd.f32 %v921_v37, %v920_v34  ;;  %v1530_v36 = vld [vmem:[#allocation2 + $0x28] sm:$0xff] }
 0x224   :  { %v1504_v42 = vpop.eup %1503  ;;  %v512_v43 = vadd.f32 1.0, %v1502_v40  ;;  %1314 = vmatprep.mubr.bf16.mxu1 %v780_v38  ;;  %v1531_v38 = vld [vmem:[#allocation2 + $0x30] sm:$0xff] }
 0x225   :  { %v1506_v61 = vpop.eup %1505  ;;  %1515 = vrcp.f32 %v507_v41  ;;  %v510_v44 = vadd.f32 1.0, %v1504_v42  ;;  %1315 = vmatmul.mubr.bf16.gmra.mrb[20].mxu1 %v781_v35  ;;  %v923_v51 = vrot.slane %v922_v58, 2  ;;  %v1532_v42 = vld [vmem:[#allocation2 + $0x38] sm:$0xff] }
 0x226   :  { %v1508_v7 = vpop.eup %1507  ;;  %1517 = vrcp.f32 %v512_v43  ;;  %v513_v10 = vadd.f32 1.0, %v1506_v61 }
 0x227   :  { %v1510_v14 = vpop.eup %1509  ;;  %1519 = vrcp.f32 %v510_v44  ;;  %v511_v52 = vadd.f32 1.0, %v1508_v7  ;;  %v924_v53 = vadd.f32 %v923_v51, %v922_v58 }
 0x228   :  { %v1512_v16 = vpop.eup %1511  ;;  %556 = vst [vmem:[#allocation7 + $0x50] sm:$0xff] %v1510_v14  ;;  %1521 = vrcp.f32 %v513_v10 }
 0x229   :  { %554 = vst [vmem:[#allocation7 + $0x40] sm:$0xff] %v1512_v16  ;;  %1523 = vrcp.f32 %v511_v52  ;;  %v1514_v32 = vpop.eup %1513  ;;  %v925_v55 = vrot.slane %v924_v53, 1 }
 0x22a   :  { %557 = vst [vmem:[#allocation7 + $0x58] sm:$0xff] %v1514_v32  ;;  %v783_v56 = vpack.c.bf16 %v1514_v32, %v1510_v14 }
 0x22b   :  { %v926_v60 = vadd.f32 %v925_v55, %v924_v53 }
 0x22d   :  { %v928_v62 = vmul.f32 0.0078125, %v926_v60 }
 0x22f   :  { %v1516_v1 = vpop.eup %1515  ;;  %v967_v39 = vmul.f32 0.1, %v928_v62 }
 0x230   :  { %v1518_v63 = vpop.eup %1517  ;;  %555 = vst [vmem:[#allocation7 + $0x48] sm:$0xff] %v1516_v1  ;;  %v782_v11 = vpack.c.bf16 %v1516_v1, %v1512_v16 }
 0x231   :  { %v1520_v12 = vpop.eup %1519  ;;  %560 = vst [vmem:[#allocation7 + $0x70] sm:$0xff] %v1518_v63  ;;  %v968_v18 = vadd.f32 %v1525_v48, %v967_v39  ;;  %v969_v3 = vadd.f32 %v1526_v19, %v967_v39  ;;  %v970_v22 = vadd.f32 %v1527_v21, %v967_v39  ;;  %v971_v24 = vadd.f32 %v1528_v23, %v967_v39 }
 0x232   :  { %v1522_v15 = vpop.eup %1521  ;;  %558 = vst [vmem:[#allocation7 + $0x60] sm:$0xff] %v1520_v12  ;;  %1318 = vmatprep.mubr.bf16.mxu1 %v782_v11  ;;  %v972_v35 = vadd.f32 %v1529_v20, %v967_v39  ;;  %v973_v37 = vadd.f32 %v1530_v36, %v967_v39  ;;  %v974_v40 = vadd.f32 %v1531_v38, %v967_v39 }
 0x233   :  { %v1524_v28 = vpop.eup %1523  ;;  %561 = vst [vmem:[#allocation7 + $0x78] sm:$0xff] %v1522_v15  ;;  %1319 = vmatmul.mubr.bf16.gmra.mrb[24].mxu1 %v783_v56  ;;  %v785_v34 = vpack.c.bf16 %v1522_v15, %v1518_v63  ;;  %v975_v43 = vadd.f32 %v1532_v42, %v967_v39  ;;  %v976_v58 = vadd.f32 %v967_v39, %v1802_v47  ;;  %984 = vst [vmem:[#allocation8] sm:$0xff] %v968_v18 }
 0x234   :  { %559 = vst [vmem:[#allocation7 + $0x68] sm:$0xff] %v1524_v28  ;;  %v784_v41 = vpack.c.bf16 %v1524_v28, %v1520_v12  ;;  %v977_v61 = vadd.f32 %v967_v39, %v1817_v54  ;;  %985 = vst [vmem:[#allocation8 + $0x8] sm:$0xff] %v969_v3  ;;  %v978_v44 = vadd.f32 %v967_v39, %v1820_v59 }
 0x235   :  { %986 = vst [vmem:[#allocation8 + $0x10] sm:$0xff] %v970_v22  ;;  %987 = vst [vmem:[#allocation8 + $0x18] sm:$0xff] %v971_v24  ;;  %v979_v7 = vadd.f32 %v967_v39, %v1829_v0  ;;  %v980_v10 = vadd.f32 %v967_v39, %v1835_v5  ;;  %v981_v51 = vadd.f32 %v967_v39, %v1841_v9 }
 0x236   :  { %988 = vst [vmem:[#allocation8 + $0x20] sm:$0xff] %v972_v35  ;;  %989 = vst [vmem:[#allocation8 + $0x28] sm:$0xff] %v973_v37  ;;  %1322 = vmatprep.mubr.bf16.mxu1 %v784_v41  ;;  %v982_v47 = vadd.f32 %v967_v39, %v1847_v13  ;;  %v983_v54 = vadd.f32 %v967_v39, %v1853_v17 }
 0x237   :  { %990 = vst [vmem:[#allocation8 + $0x30] sm:$0xff] %v974_v40  ;;  %991 = vst [vmem:[#allocation8 + $0x38] sm:$0xff] %v975_v43 }
 0x238   :  { %992 = vst [vmem:[#allocation8 + $0x40] sm:$0xff] %v976_v58  ;;  %993 = vst [vmem:[#allocation8 + $0x48] sm:$0xff] %v977_v61 }
 0x239   :  { %994 = vst [vmem:[#allocation8 + $0x50] sm:$0xff] %v978_v44  ;;  %995 = vst [vmem:[#allocation8 + $0x58] sm:$0xff] %v979_v7 }
 0x23a   :  { %996 = vst [vmem:[#allocation8 + $0x60] sm:$0xff] %v980_v10  ;;  %997 = vst [vmem:[#allocation8 + $0x68] sm:$0xff] %v981_v51 }
 0x23b   :  { %998 = vst [vmem:[#allocation8 + $0x70] sm:$0xff] %v982_v47  ;;  %999 = vst [vmem:[#allocation8 + $0x78] sm:$0xff] %v983_v54  ;;  %1323 = vmatmul.mubr.bf16.gmra.mrb[28].mxu1 %v785_v34 }
 0x23c   :  { %1588 = shalt.err (!%p1585_p6)
}
 0x23d   :  { %s1589_s16 = scalar_lea.hbm %s2132_s10, 2048 }
 0x23e   :  { %p1590_p7 = scmp.ne.s32.totalorder %s2132_s10, %s1589_s16  ;;  %p1593_p8 = scmp.lt.u32.totalorder %s1589_s16, %s2132_s10 }
 0x240   :  { %p1595_p9 = pnand %p1593_p8, %p1590_p7 }
 0x242   :  { %1598 = shalt.err (!%p1595_p9)
}
 0x243   :  { %1072 = dma.vmem_to_hbm [thread:$0]  %s1067_s6, 2048, %s2132_s10, [#allocation9], %s1652_s27, %s1652_s27, %s1653_s28  }
 0x244   :  { %s1599_s18 = scalar_lea.vmem %s2051_s1, 2048  ;;  %p1604_p11 = scmp.lt.s32.totalorder %s2051_s1, %s2051_s1 }
 0x245   :  { %p1600_p10 = scmp.ne.s32.totalorder %s2051_s1, %s1599_s18  ;;  %p1605_p12 = scmp.lt.s32.totalorder %s1599_s18, %s1599_s18 }
 0x247   :  { %p1606_p13 = por %p1605_p12, %p1604_p11 }
 0x249   :  { %p1607_p0 = pnand %p1606_p13, %p1600_p10 }
 0x24b   :  { %1610 = shalt.err (!%p1607_p0)
}
 0x24c   :  { %s1611_s25 = scalar_lea.hbm %s2131_s9, 2048 }
 0x24d   :  { %p1612_p1 = scmp.ne.s32.totalorder %s2131_s9, %s1611_s25  ;;  %p1615_p2 = scmp.lt.u32.totalorder %s1611_s25, %s2131_s9 }
 0x24f   :  { %p1617_p3 = pnand %p1615_p2, %p1612_p1 }
 0x251   :  { %1620 = shalt.err (!%p1617_p3)
}
 0x252   :  { %1060 = dma.vmem_to_hbm [thread:$0]  %s2051_s1, 2048, %s2131_s9, [#allocation4], %s1652_s27, %s1652_s27, %s1653_s28  }
 0x253   :  { %v1133_v59 = vld [vmem:[%s2130_s8] ss:$0 sm:$0xff]  ;;  %s1657_s8 = smov [#allocation10]  }
 0x254   :  { %s1078_s9 = sshll.u32 %s1657_s8, 4  ;;  %s1079_s9 = int_to_ptr.vmem [resolvable:$true] %s1078_s9 }
 0x255   :  { %s1621_s4 = scalar_lea.vmem %s1079_s9, 2048  ;;  %p1626_p5 = scmp.lt.s32.totalorder %s1079_s9, %s1079_s9 }
 0x256   :  { %p1622_p4 = scmp.ne.s32.totalorder %s1079_s9, %s1621_s4  ;;  %p1627_p6 = scmp.lt.s32.totalorder %s1621_s4, %s1621_s4 }
 0x258   :  { %p1628_p7 = por %p1627_p6, %p1626_p5 }
 0x25a   :  { %p1629_p8 = pnand %p1628_p7, %p1622_p4 }
 0x2f0   :  { %v1312_v0 = vpop.f32.mrb[16].mxu1 }
 0x2f1   :  { %v827_v5 = vpop.f32.mrb[17].mxu1  ;;  %v836_v14 = vadd.f32 %v1312_v0, %v1133_v59 }
 0x2f2   :  { %v828_v9 = vadd.f32 %v1133_v59, %v827_v5  ;;  %v1313_v13 = vpop.f32.mrb[18].mxu1 }
 0x2f3   :  { %v830_v17 = vpop.f32.mrb[19].mxu1  ;;  %v839_v53 = vadd.f32 %v1313_v13, %v1133_v59  ;;  %v931_v55 = vsub.f32 %v1916_v33, %v836_v14 }
 0x2f4   :  { %v831_v52 = vadd.f32 %v1133_v59, %v830_v17  ;;  %v929_v16 = vsub.f32 %v1912_v30, %v828_v9 }
 0x2f5   :  { %v932_v1 = vsub.f32 %v1910_v29, %v839_v53 }
 0x2f6   :  { %v930_v32 = vsub.f32 %v1914_v31, %v831_v52 }
 0x2f8   :  { %v945_v56 = vadd.f32 %v930_v32, %v929_v16  ;;  %v1316_v60 = vpop.f32.mrb[20].mxu1 }
 0x2f9   :  { %v843_v62 = vpop.f32.mrb[21].mxu1  ;;  %v852_v15 = vadd.f32 %v1316_v60, %v1133_v59  ;;  %v1002_v60 = vld [vmem:[#allocation5 + $0x10] sm:$0xff] }
 0x2fa   :  { %v946_v63 = vadd.f32 %v945_v56, %v931_v55  ;;  %v844_v39 = vadd.f32 %v1133_v59, %v843_v62  ;;  %v1317_v11 = vpop.f32.mrb[22].mxu1  ;;  %v1001_v56 = vld [vmem:[#allocation5 + $0x8] sm:$0xff]  ;;  %v1004_v62 = vld [vmem:[#allocation5 + $0x20] sm:$0xff] }
 0x2fb   :  { %v846_v12 = vpop.f32.mrb[23].mxu1  ;;  %v855_v3 = vadd.f32 %v1317_v11, %v1133_v59  ;;  %v935_v33 = vsub.f32 %v1934_v50, %v852_v15  ;;  %v1010_v11 = vld [vmem:[#allocation5 + $0x50] sm:$0xff]  ;;  %v1012_v15 = vld [vmem:[#allocation5 + $0x60] sm:$0xff] }
 0x2fc   :  { %v933_v48 = vsub.f32 %v1930_v46, %v844_v39  ;;  %v947_v18 = vadd.f32 %v946_v63, %v932_v1  ;;  %v847_v19 = vadd.f32 %v1133_v59, %v846_v12  ;;  %v1006_v1 = vld [vmem:[#allocation5 + $0x30] sm:$0xff]  ;;  %v1007_v63 = vld [vmem:[#allocation5 + $0x38] sm:$0xff]  ;;  %v1008_v39 = vld [vmem:[#allocation5 + $0x40] sm:$0xff] }
 0x2fd   :  { %v936_v22 = vsub.f32 %v1927_v45, %v855_v3  ;;  %v1011_v12 = vld [vmem:[#allocation5 + $0x58] sm:$0xff] }
 0x2fe   :  { %v948_v30 = vadd.f32 %v947_v18, %v933_v48  ;;  %v934_v31 = vsub.f32 %v1932_v49, %v847_v19  ;;  %v1013_v48 = vld [vmem:[#allocation5 + $0x68] sm:$0xff]  ;;  %v1014_v18 = vld [vmem:[#allocation5 + $0x70] sm:$0xff]  ;;  %v1015_v19 = vld [vmem:[#allocation5 + $0x78] sm:$0xff] }
 0x300   :  { %v949_v21 = vadd.f32 %v948_v30, %v934_v31 }
 0x302   :  { %v950_v23 = vadd.f32 %v949_v21, %v935_v33 }
 0x304   :  { %v951_v29 = vadd.f32 %v950_v23, %v936_v22 }
 0x306   :  { %v1320_v24 = vpop.f32.mrb[24].mxu1 }
 0x307   :  { %v859_v28 = vpop.f32.mrb[25].mxu1  ;;  %v868_v36 = vadd.f32 %v1320_v24, %v1133_v59 }
 0x308   :  { %v860_v34 = vadd.f32 %v1133_v59, %v859_v28  ;;  %v1321_v20 = vpop.f32.mrb[26].mxu1 }
 0x309   :  { %v862_v35 = vpop.f32.mrb[27].mxu1  ;;  %v871_v40 = vadd.f32 %v1321_v20, %v1133_v59  ;;  %v939_v50 = vsub.f32 %v1954_v8, %v868_v36 }
 0x30a   :  { %v937_v46 = vsub.f32 %v1950_v4, %v860_v34  ;;  %v863_v37 = vadd.f32 %v1133_v59, %v862_v35 }
 0x30b   :  { %v940_v43 = vsub.f32 %v1947_v2, %v871_v40 }
 0x30c   :  { %v952_v38 = vadd.f32 %v951_v29, %v937_v46  ;;  %v938_v49 = vsub.f32 %v1952_v6, %v863_v37 }
 0x30e   :  { %v953_v41 = vadd.f32 %v952_v38, %v938_v49  ;;  %v1324_v42 = vpop.f32.mrb[28].mxu1 }
 0x30f   :  { %v875_v45 = vpop.f32.mrb[29].mxu1  ;;  %v884_v10 = vadd.f32 %v1324_v42, %v1133_v59 }
 0x310   :  { %v954_v58 = vadd.f32 %v953_v41, %v939_v50  ;;  %v876_v61 = vadd.f32 %v1133_v59, %v875_v45  ;;  %v1325_v44 = vpop.f32.mrb[30].mxu1 }
 0x311   :  { %v878_v7 = vpop.f32.mrb[31].mxu1  ;;  %v887_v0 = vadd.f32 %v1325_v44, %v1133_v59  ;;  %v943_v8 = vsub.f32 %v1971_v27, %v884_v10 }
 0x312   :  { %v941_v51 = vsub.f32 %v1967_v57, %v876_v61  ;;  %v955_v4 = vadd.f32 %v954_v58, %v940_v43  ;;  %v879_v47 = vadd.f32 %v1133_v59, %v878_v7  ;;  %v1000_v57 = vld [vmem:[#allocation5] sm:$0xff]  ;;  %v1003_v59 = vld [vmem:[#allocation5 + $0x18] sm:$0xff] }
 0x313   :  { %v944_v9 = vsub.f32 %v1965_v25, %v887_v0  ;;  %v1009_v25 = vld [vmem:[#allocation5 + $0x48] sm:$0xff] }
 0x314   :  { %v956_v54 = vadd.f32 %v955_v4, %v941_v51  ;;  %v942_v6 = vsub.f32 %v1969_v26, %v879_v47  ;;  %v1005_v26 = vld [vmem:[#allocation5 + $0x28] sm:$0xff] }
 0x316   :  { %v957_v5 = vadd.f32 %v956_v54, %v942_v6 }
 0x318   :  { %v958_v13 = vadd.f32 %v957_v5, %v943_v8 }
 0x31a   :  { %v959_v2 = vadd.f32 %v958_v13, %v944_v9 }
 0x31c   :  { %v960_v17 = vrot.slane %v959_v2, 4 }
 0x31e   :  { %v961_v14 = vadd.f32 %v960_v17, %v959_v2 }
 0x320   :  { %v962_v52 = vrot.slane %v961_v14, 2 }
 0x322   :  { %v963_v16 = vadd.f32 %v962_v52, %v961_v14 }
 0x324   :  { %v964_v53 = vrot.slane %v963_v16, 1 }
 0x326   :  { %v965_v32 = vadd.f32 %v964_v53, %v963_v16 }
 0x328   :  { %v966_v55 = vmul.f32 0.0078125, %v965_v32 }
 0x32a   :  { %v1016_v27 = vmul.f32 0.1, %v966_v55 }
 0x32c   :  { %v1017_v30 = vadd.f32 %v1016_v27, %v1000_v57  ;;  %v1018_v3 = vadd.f32 %v1016_v27, %v1001_v56  ;;  %v1019_v31 = vadd.f32 %v1016_v27, %v1002_v60  ;;  %v1020_v33 = vadd.f32 %v1016_v27, %v1003_v59 }
 0x32d   :  { %v1021_v21 = vadd.f32 %v1016_v27, %v1004_v62  ;;  %v1022_v22 = vadd.f32 %v1016_v27, %v1005_v26  ;;  %v1023_v23 = vadd.f32 %v1016_v27, %v1006_v1  ;;  %v1024_v29 = vadd.f32 %v1016_v27, %v1007_v63 }
 0x32e   :  { %v1025_v24 = vadd.f32 %v1016_v27, %v1008_v39  ;;  %v1026_v28 = vadd.f32 %v1016_v27, %v1009_v25  ;;  %v1027_v34 = vadd.f32 %v1016_v27, %v1010_v11  ;;  %v1028_v20 = vadd.f32 %v1016_v27, %v1011_v12  ;;  %1033 = vst [vmem:[#allocation10] sm:$0xff] %v1017_v30 }
 0x32f   :  { %1034 = vst [vmem:[#allocation10 + $0x8] sm:$0xff] %v1018_v3  ;;  %1035 = vst [vmem:[#allocation10 + $0x10] sm:$0xff] %v1019_v31  ;;  %v1029_v35 = vadd.f32 %v1016_v27, %v1012_v15  ;;  %v1030_v36 = vadd.f32 %v1016_v27, %v1013_v48  ;;  %v1031_v46 = vadd.f32 %v1016_v27, %v1014_v18 }
 0x330   :  { %1036 = vst [vmem:[#allocation10 + $0x18] sm:$0xff] %v1020_v33  ;;  %v1032_v37 = vadd.f32 %v1016_v27, %v1015_v19  ;;  %1037 = vst [vmem:[#allocation10 + $0x20] sm:$0xff] %v1021_v21 }
 0x331   :  { %1038 = vst [vmem:[#allocation10 + $0x28] sm:$0xff] %v1022_v22  ;;  %1039 = vst [vmem:[#allocation10 + $0x30] sm:$0xff] %v1023_v23 }
 0x332   :  { %1040 = vst [vmem:[#allocation10 + $0x38] sm:$0xff] %v1024_v29  ;;  %1041 = vst [vmem:[#allocation10 + $0x40] sm:$0xff] %v1025_v24 }
 0x333   :  { %1042 = vst [vmem:[#allocation10 + $0x48] sm:$0xff] %v1026_v28  ;;  %1043 = vst [vmem:[#allocation10 + $0x50] sm:$0xff] %v1027_v34 }
 0x334   :  { %1044 = vst [vmem:[#allocation10 + $0x58] sm:$0xff] %v1028_v20  ;;  %1045 = vst [vmem:[#allocation10 + $0x60] sm:$0xff] %v1029_v35 }
 0x335   :  { %1046 = vst [vmem:[#allocation10 + $0x68] sm:$0xff] %v1030_v36  ;;  %1047 = vst [vmem:[#allocation10 + $0x70] sm:$0xff] %v1031_v46 }
 0x336   :  { %1048 = vst [vmem:[#allocation10 + $0x78] sm:$0xff] %v1032_v37 }
 0x337   :  { %1632 = shalt.err (!%p1629_p8)
}
 0x338   :  { %s1633_s1 = scalar_lea.hbm %s2133_s11, 2048 }
 0x339   :  { %p1634_p9 = scmp.ne.s32.totalorder %s2133_s11, %s1633_s1  ;;  %p1637_p10 = scmp.lt.u32.totalorder %s1633_s1, %s2133_s11 }
 0x33b   :  { %p1639_p11 = pnand %p1637_p10, %p1634_p9 }
 0x33d   :  { %1642 = shalt.err (!%p1639_p11)
}
 0x33e   :  { %1084 = dma.vmem_to_hbm [thread:$0]  %s1079_s9, 2048, %s2133_s11, [#allocation9], %s1652_s27, %s1652_s27, %s1653_s28  }
 0x33f   :  { %1647 = dma.done.wait [#allocation4], 2048  }
 0x340   :  { %1648 = vsyncadd [#allocation4], 4294965248 }
 0x341   :  { %1649 = dma.done.wait [#allocation9], 4096  }
 0x342   :  { %1650 = vsyncadd [#allocation9], 4294963200 }
 0x343   :  { %1094 = vsyncpa [#allocation3], 1 }
 0x344   :  { %1095 = vsyncpa [#allocation6], 1 }
 0x345   :  { %1096 = vsyncpa [#allocation4], 1 }
 0x346   :  { %1097 = vsyncpa [#allocation9], 1 }

</bundles_post_ra>
